<compile_context>
chip_gen: v6e
topology: v6e:2x2x1
jax: 0.10.0
libtpu: 0.0.40
codegen_flags: <defaults>
</compile_context>

<pallas_src>
import math
import functools

import jax
import jax.numpy as jnp
from jax.experimental import pallas as pl
from jax.experimental.pallas import tpu as pltpu

configs = {'win_size': 4, 'head': 2}


def gaa_kernel(x_ref, wqkv_ref, bqkv_ref, wo_ref, bo_ref, out_ref, *,
               num_head, head_size, ahs):
    """One grid step == a block of `wpb` attention windows.

    x_ref:    (wpb, N, C)       this step's windows
    wqkv_ref: (C, 3*AHS)        fused Q/K/V weight (Q columns pre-scaled)
    bqkv_ref: (1, 3*AHS)        fused Q/K/V bias   (Q part pre-scaled)
    wo_ref:   (AHS, C), bo_ref: (1, C)
    out_ref:  (wpb, N, C)
    """
    wpb, n_tok, dim = x_ref.shape
    t = wpb * n_tok
    x = x_ref[...].reshape(t, dim)                      # (T, C), T = wpb*N

    # Fused QKV projection: single MXU matmul + single bias add.
    qkv = jnp.dot(x, wqkv_ref[...],
                  preferred_element_type=jnp.float32) + bqkv_ref[...]

    # Per-head attention, batched over the window axis.  num_head=2 -> tiny
    # static loop; the attention scale is already folded into the Q weights.
    ctx_heads = []
    for h in range(num_head):
        lo = h * head_size
        qh = qkv[:, lo:lo + head_size].reshape(wpb, n_tok, head_size)
        kh = qkv[:, ahs + lo:ahs + lo + head_size].reshape(wpb, n_tok, head_size)
        vh = qkv[:, 2 * ahs + lo:2 * ahs + lo + head_size].reshape(
            wpb, n_tok, head_size)

        scores = jnp.einsum('wnd,wmd->wnm', qh, kh,
                            preferred_element_type=jnp.float32)   # (wpb, N, N)
        m = jnp.max(scores, axis=-1, keepdims=True)
        e = jnp.exp(scores - m)
        denom = jnp.sum(e, axis=-1, keepdims=True)
        probs = e * pl.reciprocal(denom, approx=True)             # softmax(dim=-1)

        ctx_heads.append(jnp.einsum('wnm,wmd->wnd', probs, vh,
                                    preferred_element_type=jnp.float32))

    # Head-major concat == permute(0,1,2,4,3,5).reshape(..., all_head_size)
    ctx = jnp.concatenate(ctx_heads, axis=-1).reshape(t, ahs)     # (T, AHS)

    out = jnp.dot(ctx, wo_ref[...],
                  preferred_element_type=jnp.float32) + bo_ref[...]
    out_ref[...] = out.reshape(wpb, n_tok, dim).astype(out_ref.dtype)


def gaa_forward(x, params, num_head, num_blocks=2):
    b, wh, ww, n, dim = x.shape
    ahs = params['wq'].shape[1]
    head_size = ahs // num_head
    bw = b * wh * ww
    if bw % num_blocks != 0:
        num_blocks = 1
    wpb = bw // num_blocks                       # windows per grid step
    xf = x.reshape(bw, n, dim)

    # Fuse Q/K/V weights & biases; fold the 1/sqrt(Dh) scale into the Q part.
    scale = 1.0 / math.sqrt(head_size)
    wqkv = jnp.concatenate(
        [params['wq'] * scale, params['wk'], params['wv']], axis=1)   # (C, 3*AHS)
    bqkv = jnp.concatenate(
        [params['bq'] * scale, params['bk'], params['bv']], axis=1)   # (1, 3*AHS)

    kernel = functools.partial(gaa_kernel, num_head=num_head,
                               head_size=head_size, ahs=ahs)

    out = pl.pallas_call(
        kernel,
        out_shape=jax.ShapeDtypeStruct((bw, n, dim), x.dtype),
        grid_spec=pltpu.PrefetchScalarGridSpec(
            num_scalar_prefetch=0,
            grid=(num_blocks,),
            in_specs=[
                pl.BlockSpec((wpb, n, dim), lambda i: (i, 0, 0)),   # x block
                pl.BlockSpec((dim, 3 * ahs), lambda i: (0, 0)),     # Wqkv (resident)
                pl.BlockSpec((1, 3 * ahs), lambda i: (0, 0)),       # bqkv
                pl.BlockSpec((ahs, dim), lambda i: (0, 0)),         # Wo
                pl.BlockSpec((1, dim), lambda i: (0, 0)),           # bo
            ],
            out_specs=pl.BlockSpec((wpb, n, dim), lambda i: (i, 0, 0)),
        ),
        compiler_params=pltpu.CompilerParams(
            dimension_semantics=("parallel",)),                     # v7x: 2 TCs
    )(xf, wqkv, bqkv, params['wo'], params['bo'])

    return out.reshape(b, wh, ww, n, dim)


def gaa_reference(x, params, num_head):
    """Pure-JAX reference mirroring the PyTorch forward (axial=False)."""
    b, wh, ww, n, dim = x.shape
    ahs = params['wq'].shape[1]
    dh = ahs // num_head
    Q = x @ params['wq'] + params['bq'][0]
    K = x @ params['wk'] + params['bk'][0]
    V = x @ params['wv'] + params['bv'][0]

    def split(t):  # -> (b, wh, ww, head, n, dh)
        return t.reshape(b, wh, ww, n, num_head, dh).transpose(0, 1, 2, 4, 3, 5)

    Qh, Kh, Vh = split(Q), split(K), split(V)
    scores = jnp.einsum('bpqhnd,bpqhmd->bpqhnm', Qh, Kh) / math.sqrt(dh)
    probs = jax.nn.softmax(scores, axis=-1)
    ctx = jnp.einsum('bpqhnm,bpqhmd->bpqhnd', probs, Vh)
    ctx = ctx.transpose(0, 1, 2, 4, 3, 5).reshape(b, wh, ww, n, ahs)
    return ctx @ params['wo'] + params['bo'][0]


if __name__ == "__main__":
    # Module hyperparameters
    dim = 32
    num_head = configs['head']                 # 2
    head_size = dim // num_head                # 16
    all_head_size = num_head * head_size       # 32
    win = configs['win_size']                  # 4
    n_tokens = win * win                       # 16 tokens per window

    # Small shapes: batch=2, 2x2 window grid, 16 tokens per window, dim=32
    b, wh, ww = 2, 2, 2

    key = jax.random.PRNGKey(0)
    kx, kq, kk, kv, ko, kbq, kbk, kbv, kbo = jax.random.split(key, 9)

    x = jax.random.normal(kx, (b, wh, ww, n_tokens, dim), dtype=jnp.float32)

    s = 1.0 / math.sqrt(dim)
    params = {
        'wq': jax.random.uniform(kq, (dim, all_head_size), jnp.float32, -s, s),
        'bq': jax.random.uniform(kbq, (1, all_head_size), jnp.float32, -s, s),
        'wk': jax.random.uniform(kk, (dim, all_head_size), jnp.float32, -s, s),
        'bk': jax.random.uniform(kbk, (1, all_head_size), jnp.float32, -s, s),
        'wv': jax.random.uniform(kv, (dim, all_head_size), jnp.float32, -s, s),
        'bv': jax.random.uniform(kbv, (1, all_head_size), jnp.float32, -s, s),
        'wo': jax.random.uniform(ko, (all_head_size, dim), jnp.float32, -s, s),
        'bo': jax.random.uniform(kbo, (1, dim), jnp.float32, -s, s),
    }

    out = gaa_forward(x, params, num_head)
    out = jax.block_until_ready(out)

    ref = gaa_reference(x, params, num_head)
    assert out.shape == (b, wh, ww, n_tokens, dim)
    # Tolerance loosened slightly vs. 1e-4: the EUP approximate reciprocal in
    # the softmax denominator is not bit-exact against the exact-divide ref.
    assert jnp.allclose(out, ref, atol=2e-3, rtol=2e-3), "mismatch vs JAX reference"

    print("KERNEL_OK")
</pallas_src>

<mosaic_0001>
module attributes {stable_mosaic.version = 11 : i64} {
  func.func @gaa_kernel(%arg0: i32, %arg1: memref<4x16x32xf32, #tpu.memory_space<vmem>>, %arg2: memref<32x96xf32, #tpu.memory_space<vmem>>, %arg3: memref<1x96xf32, #tpu.memory_space<vmem>>, %arg4: memref<32x32xf32, #tpu.memory_space<vmem>>, %arg5: memref<1x32xf32, #tpu.memory_space<vmem>>, %arg6: memref<4x16x32xf32, #tpu.memory_space<vmem>>) attributes {dimension_semantics = [#tpu.dimension_semantics<parallel>], iteration_bounds = array<i64: 2>, scalar_prefetch = 0 : i64, scratch_operands = 0 : i64, tpu.core_type = #tpu.core_type<tc>, window_params = [{transform_indices = @transform_0, window_bounds = array<i64: 4, 16, 32>}, {pipeline_mode = #tpu.pipeline_mode<synchronous>, transform_indices = @transform_1, window_bounds = array<i64: 32, 96>}, {pipeline_mode = #tpu.pipeline_mode<synchronous>, transform_indices = @transform_2, window_bounds = array<i64: 1, 96>}, {pipeline_mode = #tpu.pipeline_mode<synchronous>, transform_indices = @transform_3, window_bounds = array<i64: 32, 32>}, {pipeline_mode = #tpu.pipeline_mode<synchronous>, transform_indices = @transform_4, window_bounds = array<i64: 1, 32>}, {transform_indices = @transform_5, window_bounds = array<i64: 4, 16, 32>}]} {
    %c0 = arith.constant 0 : index
    %c0_0 = arith.constant 0 : index
    %c0_1 = arith.constant 0 : index
    %0 = vector.load %arg1[%c0, %c0_0, %c0_1] : memref<4x16x32xf32, #tpu.memory_space<vmem>>, vector<4x16x32xf32>
    %1 = vector.shape_cast %0 : vector<4x16x32xf32> to vector<64x32xf32>
    %c0_2 = arith.constant 0 : index
    %c0_3 = arith.constant 0 : index
    %2 = vector.load %arg2[%c0_2, %c0_3] : memref<32x96xf32, #tpu.memory_space<vmem>>, vector<32x96xf32>
    %cst = arith.constant dense<0.000000e+00> : vector<64x96xf32>
    %3 = tpu.matmul %1, %2, %cst {dimension_numbers = #tpu.dot_dimension_numbers<[1], [0], [0], [1], [0, 0, 1, 1], [], []>} : vector<64x32xf32>, vector<32x96xf32>, vector<64x96xf32> -> vector<64x96xf32>
    %c0_4 = arith.constant 0 : index
    %c0_5 = arith.constant 0 : index
    %4 = vector.load %arg3[%c0_4, %c0_5] : memref<1x96xf32, #tpu.memory_space<vmem>>, vector<1x96xf32>
    %5 = vector.broadcast %4 : vector<1x96xf32> to vector<64x96xf32>
    %6 = arith.addf %3, %5 : vector<64x96xf32>
    %7 = vector.extract_strided_slice %6 {offsets = [0, 0], sizes = [64, 16], strides = [1, 1]} : vector<64x96xf32> to vector<64x16xf32>
    %8 = vector.shape_cast %7 : vector<64x16xf32> to vector<4x16x16xf32>
    %9 = vector.extract_strided_slice %6 {offsets = [0, 32], sizes = [64, 16], strides = [1, 1]} : vector<64x96xf32> to vector<64x16xf32>
    %10 = vector.shape_cast %9 : vector<64x16xf32> to vector<4x16x16xf32>
    %11 = vector.extract_strided_slice %6 {offsets = [0, 64], sizes = [64, 16], strides = [1, 1]} : vector<64x96xf32> to vector<64x16xf32>
    %12 = vector.shape_cast %11 : vector<64x16xf32> to vector<4x16x16xf32>
    "tpu.trace_start"() <{level = 10 : i32, message = "wnd,wmd->wnm"}> : () -> ()
    %cst_6 = arith.constant dense<0.000000e+00> : vector<4x16x16xf32>
    %13 = tpu.matmul %8, %10, %cst_6 {dimension_numbers = #tpu.dot_dimension_numbers<[2], [2], [1], [1], [0, 0, 0, 1, 1, 1], [0], [0]>} : vector<4x16x16xf32>, vector<4x16x16xf32>, vector<4x16x16xf32> -> vector<4x16x16xf32>
    "tpu.trace_stop"() : () -> ()
    %cst_7 = arith.constant dense<0xFF800000> : vector<4x16xf32>
    %14 = vector.multi_reduction <maximumf>, %13, %cst_7 [2] : vector<4x16x16xf32> to vector<4x16xf32>
    %15 = vector.shape_cast %14 : vector<4x16xf32> to vector<4x16x1xf32>
    %16 = vector.broadcast %15 : vector<4x16x1xf32> to vector<4x16x16xf32>
    %17 = arith.subf %13, %16 : vector<4x16x16xf32>
    %18 = math.exp %17 : vector<4x16x16xf32>
    %cst_8 = arith.constant dense<0.000000e+00> : vector<4x16xf32>
    %19 = vector.multi_reduction <add>, %18, %cst_8 [2] : vector<4x16x16xf32> to vector<4x16xf32>
    %20 = vector.shape_cast %19 : vector<4x16xf32> to vector<4x16x1xf32>
    %21 = tpu.reciprocal %20 {approx = true} : vector<4x16x1xf32> -> vector<4x16x1xf32>
    %22 = vector.broadcast %21 : vector<4x16x1xf32> to vector<4x16x16xf32>
    %23 = arith.mulf %18, %22 : vector<4x16x16xf32>
    "tpu.trace_start"() <{level = 10 : i32, message = "wnm,wmd->wnd"}> : () -> ()
    %cst_9 = arith.constant dense<0.000000e+00> : vector<4x16x16xf32>
    %24 = tpu.matmul %23, %12, %cst_9 {dimension_numbers = #tpu.dot_dimension_numbers<[2], [1], [1], [2], [0, 0, 0, 1, 1, 2], [0], [0]>} : vector<4x16x16xf32>, vector<4x16x16xf32>, vector<4x16x16xf32> -> vector<4x16x16xf32>
    "tpu.trace_stop"() : () -> ()
    %25 = vector.extract_strided_slice %6 {offsets = [0, 16], sizes = [64, 16], strides = [1, 1]} : vector<64x96xf32> to vector<64x16xf32>
    %26 = vector.shape_cast %25 : vector<64x16xf32> to vector<4x16x16xf32>
    %27 = vector.extract_strided_slice %6 {offsets = [0, 48], sizes = [64, 16], strides = [1, 1]} : vector<64x96xf32> to vector<64x16xf32>
    %28 = vector.shape_cast %27 : vector<64x16xf32> to vector<4x16x16xf32>
    %29 = vector.extract_strided_slice %6 {offsets = [0, 80], sizes = [64, 16], strides = [1, 1]} : vector<64x96xf32> to vector<64x16xf32>
    %30 = vector.shape_cast %29 : vector<64x16xf32> to vector<4x16x16xf32>
    "tpu.trace_start"() <{level = 10 : i32, message = "wnd,wmd->wnm"}> : () -> ()
    %cst_10 = arith.constant dense<0.000000e+00> : vector<4x16x16xf32>
    %31 = tpu.matmul %26, %28, %cst_10 {dimension_numbers = #tpu.dot_dimension_numbers<[2], [2], [1], [1], [0, 0, 0, 1, 1, 1], [0], [0]>} : vector<4x16x16xf32>, vector<4x16x16xf32>, vector<4x16x16xf32> -> vector<4x16x16xf32>
    "tpu.trace_stop"() : () -> ()
    %cst_11 = arith.constant dense<0xFF800000> : vector<4x16xf32>
    %32 = vector.multi_reduction <maximumf>, %31, %cst_11 [2] : vector<4x16x16xf32> to vector<4x16xf32>
    %33 = vector.shape_cast %32 : vector<4x16xf32> to vector<4x16x1xf32>
    %34 = vector.broadcast %33 : vector<4x16x1xf32> to vector<4x16x16xf32>
    %35 = arith.subf %31, %34 : vector<4x16x16xf32>
    %36 = math.exp %35 : vector<4x16x16xf32>
    %cst_12 = arith.constant dense<0.000000e+00> : vector<4x16xf32>
    %37 = vector.multi_reduction <add>, %36, %cst_12 [2] : vector<4x16x16xf32> to vector<4x16xf32>
    %38 = vector.shape_cast %37 : vector<4x16xf32> to vector<4x16x1xf32>
    %39 = tpu.reciprocal %38 {approx = true} : vector<4x16x1xf32> -> vector<4x16x1xf32>
    %40 = vector.broadcast %39 : vector<4x16x1xf32> to vector<4x16x16xf32>
    %41 = arith.mulf %36, %40 : vector<4x16x16xf32>
    "tpu.trace_start"() <{level = 10 : i32, message = "wnm,wmd->wnd"}> : () -> ()
    %cst_13 = arith.constant dense<0.000000e+00> : vector<4x16x16xf32>
    %42 = tpu.matmul %41, %30, %cst_13 {dimension_numbers = #tpu.dot_dimension_numbers<[2], [1], [1], [2], [0, 0, 0, 1, 1, 2], [0], [0]>} : vector<4x16x16xf32>, vector<4x16x16xf32>, vector<4x16x16xf32> -> vector<4x16x16xf32>
    "tpu.trace_stop"() : () -> ()
    %43 = tpu.concatenate %24, %42 in 2 : vector<4x16x16xf32>, vector<4x16x16xf32> -> vector<4x16x32xf32>
    %44 = vector.shape_cast %43 : vector<4x16x32xf32> to vector<64x32xf32>
    %c0_14 = arith.constant 0 : index
    %c0_15 = arith.constant 0 : index
    %45 = vector.load %arg4[%c0_14, %c0_15] : memref<32x32xf32, #tpu.memory_space<vmem>>, vector<32x32xf32>
    %cst_16 = arith.constant dense<0.000000e+00> : vector<64x32xf32>
    %46 = tpu.matmul %44, %45, %cst_16 {dimension_numbers = #tpu.dot_dimension_numbers<[1], [0], [0], [1], [0, 0, 1, 1], [], []>} : vector<64x32xf32>, vector<32x32xf32>, vector<64x32xf32> -> vector<64x32xf32>
    %c0_17 = arith.constant 0 : index
    %c0_18 = arith.constant 0 : index
    %47 = vector.load %arg5[%c0_17, %c0_18] : memref<1x32xf32, #tpu.memory_space<vmem>>, vector<1x32xf32>
    %48 = vector.broadcast %47 : vector<1x32xf32> to vector<64x32xf32>
    %49 = arith.addf %46, %48 : vector<64x32xf32>
    %50 = vector.shape_cast %49 : vector<64x32xf32> to vector<4x16x32xf32>
    %c0_19 = arith.constant 0 : index
    %c0_20 = arith.constant 0 : index
    %c0_21 = arith.constant 0 : index
    %51 = vector.load %arg6[%c0_19, %c0_20, %c0_21] : memref<4x16x32xf32, #tpu.memory_space<vmem>>, vector<4x16x32xf32>
    tpu.vector_store %arg6[%c0_19, %c0_20, %c0_21], %50 {strides = array<i32>} : memref<4x16x32xf32, #tpu.memory_space<vmem>>, vector<4x16x32xf32>,
    return
  }
  func.func @transform_0(%arg0: i32) -> (i32, i32, i32) {
    %c0_i32 = arith.constant 0 : i32
    %c0_i32_0 = arith.constant 0 : i32
    %c0_i32_1 = arith.constant 0 : i32
    return %arg0, %c0_i32, %c0_i32_0 : i32, i32, i32
  }
  func.func @transform_1(%arg0: i32) -> (i32, i32) {
    %c0_i32 = arith.constant 0 : i32
    %c0_i32_0 = arith.constant 0 : i32
    %c0_i32_1 = arith.constant 0 : i32
    return %c0_i32, %c0_i32_0 : i32, i32
  }
  func.func @transform_2(%arg0: i32) -> (i32, i32) {
    %c0_i32 = arith.constant 0 : i32
    %c0_i32_0 = arith.constant 0 : i32
    %c0_i32_1 = arith.constant 0 : i32
    return %c0_i32, %c0_i32_0 : i32, i32
  }
  func.func @transform_3(%arg0: i32) -> (i32, i32) {
    %c0_i32 = arith.constant 0 : i32
    %c0_i32_0 = arith.constant 0 : i32
    %c0_i32_1 = arith.constant 0 : i32
    return %c0_i32, %c0_i32_0 : i32, i32
  }
  func.func @transform_4(%arg0: i32) -> (i32, i32) {
    %c0_i32 = arith.constant 0 : i32
    %c0_i32_0 = arith.constant 0 : i32
    %c0_i32_1 = arith.constant 0 : i32
    return %c0_i32, %c0_i32_0 : i32, i32
  }
  func.func @transform_5(%arg0: i32) -> (i32, i32, i32) {
    %c0_i32 = arith.constant 0 : i32
    %c0_i32_0 = arith.constant 0 : i32
    %c0_i32_1 = arith.constant 0 : i32
    return %arg0, %c0_i32, %c0_i32_0 : i32, i32, i32
  }
}

</mosaic_0001>

<bundles_post_ra>
// kernel: tpu_custom_call.1
= control target key start
LH: loop header
LB: loop body
LE: loop exit
PB: predicated region body
PF: predicated region fallthrough
CT: control target
= control target key end

     0   :  { %10 = vsyncpa [#allocation3], 0  ;;  %s3509_s0 = inlined_call_operand.hbm [shape: f32[8,16,32], index: 0, kind: input, shape index: {}]   ;;  %s3510_s1 = inlined_call_operand.hbm [shape: f32[32,96], index: 1, kind: input, shape index: {}]   ;;  %s3511_s2 = inlined_call_operand.vmem [shape: f32[1,96], index: 2, kind: input, shape index: {}]   ;;  %s3512_s3 = inlined_call_operand.hbm [shape: f32[32,32], index: 3, kind: input, shape index: {}]   ;;  %s3513_s4 = inlined_call_operand.vmem [shape: f32[1,32], index: 4, kind: input, shape index: {}]   ;;  %s3514_s5 = inlined_call_operand.hbm [shape: f32[8,16,32], index: 5, kind: output, shape index: {}]  }
   0x1   :  { %12 = vsyncpa [#allocation3 + $0x1], 0 }
   0x2   :  { %13 = vsyncpa [#allocation6], 0 }
   0x3   :  { %14 = vsyncpa [#allocation4], 0 }
   0x4   :  { %16 = vsyncpa [#allocation4 + $0x1], 0  ;;  %s2985_s18 = smov 0   ;;  %s2987_s19 = smov 0  }
   0x5   :  { %s2989_s20 = smov 0   ;;  %s2991_s21 = smov 0  }
   0x6 LB: > { %s3006_s22 = sadd.s32 4294967295, %s2939_s21   ;;  %s2312_s23 = sadd.s32 4294967294, %s2939_s21   ;;  %s2939_s21 = sphi %s2991_s21, %s3537_s21   ;;  %s2935_s20 = sphi %s2989_s20, %s3536_s20   ;;  %s2931_s19 = sphi %s2987_s19, %s3535_s19   ;;  %s2927_s18 = sphi %s2985_s18, %s3534_s18  }
   0x7   : > { %p42_p0 = scmp.ne.s32.totalorder %s2931_s19, %s2927_s18  ;;  %p3515_p1 = scmp.eq.s32.totalorder %s3006_s22, 0 }
   0x8   : > { %p150_p2 = scmp.eq.s32.totalorder %s3006_s22, 1  ;;  %p156_p3 = scmp.eq.s32.totalorder %s2312_s23, 1 }
   0x9   : > { %p3015_p4 = por %p3515_p1, %p42_p0  ;;  %p2313_p5 = scmp.ge.s32.totalorder %s2939_s21, 1 }
   0xa   : > { %p3020_p6 = por %p156_p3, %p42_p0  ;;  %p163_p7 = scmp.lt.s32.totalorder %s2939_s21, 3 }
   0xb   : > { %s3520_s24 = scalar_select %p3015_p4, 1, 0 }
   0xc   : > { %s3521_s25 = scalar_select %p3020_p6, 1, 0 }
   0xd   : > { %p3025_p8 = pnand %p2313_p5, %p163_p7  ;;  %s2941_s27 = smov [#allocation5]  }
   0xe   : > { %s175_s28 = sshll.u32 %s2941_s27, 4  ;;  %s2942_s30 = smov [#allocation7]   ;;  %s176_s28 = int_to_ptr.vmem [resolvable:$true] %s175_s28 }
   0xf   : > { %s3522_s26 = scalar_select %p3025_p8, 1, 0 }
  0x10   : > { %p2662_p9 = pneg %p3025_p8  ;;  %s191_s6 = sshll.u32 %s2942_s30, 4  ;;  %s192_s6 = int_to_ptr.vmem [resolvable:$true] %s191_s6 }
  0x11   : > { %s2802_s7 = scalar_lea.vmem %s176_s28, 512  ;;  %p2810_p5 = scmp.lt.s32.totalorder %s176_s28, %s176_s28 }
  0x12   : > { %p3034_p11 = pnand %p2662_p9, %p3515_p1  ;;  %p2803_p13 = scmp.ne.s32.totalorder %s176_s28, %s2802_s7 }
  0x13   : > { %p2811_p7 = scmp.lt.s32.totalorder %s2802_s7, %s2802_s7 }
  0x14   : > { %p2793_p12 = pneg %p3034_p11 }
  0x15   : > { %p2812_p10 = por %p2811_p7, %p2810_p5 }
  0x16   : > { %p2805_p0 = pnand %p2803_p13, %p2793_p12 }
  0x18   : > { %p2806_p3 = pneg %p2805_p0 }
  0x1a   : > { %p2813_p9 = pnand %p2812_p10, %p2806_p3 }
  0x1c   : > { %2816 = shalt.err (!%p2813_p9)
}
  0x1d   : > { %s3516_s8 = smov 128   ;;  %s2944_s9 = smov 8  }
  0x1e   : > { %2665 = dma.hbm_to_vmem [thread:$0]  (!%p3034_p11), %s3510_s1, 512, %s176_s28, [#allocation6], %s3516_s8, %s3516_s8, %s2944_s9  }
  0x1f   : > { %s2828_s12 = scalar_lea.vmem %s192_s6, 512  ;;  %p2836_p10 = scmp.lt.s32.totalorder %s192_s6, %s192_s6 }
  0x20   : > { %p2829_p13 = scmp.ne.s32.totalorder %s192_s6, %s2828_s12  ;;  %p2837_p3 = scmp.lt.s32.totalorder %s2828_s12, %s2828_s12 }
  0x22   : > { %p2831_p0 = pnand %p2829_p13, %p2793_p12  ;;  %p2838_p7 = por %p2837_p3, %p2836_p10 }
  0x24   : > { %p2832_p5 = pneg %p2831_p0 }
  0x26   : > { %p2839_p9 = pnand %p2838_p7, %p2832_p5 }
  0x28   : > { %2842 = shalt.err (!%p2839_p9)
}
  0x29   : > { %2668 = dma.hbm_to_vmem [thread:$0]  (!%p3034_p11), %s3512_s3, 512, %s192_s6, [#allocation6], %s3516_s8, %s3516_s8, %s2944_s9  }
  0x2a   : > { %s3063_s15 = sadd.s32 1, %s2939_s21   ;;  %s29_s16 = sadd.s32 1, %s2935_s20 }
  0x2b   : > { %s26_s17 = ssub.s32 %s2939_s21, %s3063_s15  ;;  %p36_p12 = scmp.ne.s32.totalorder %s2935_s20, %s2931_s19 }
  0x2c   : > { %p27_p13 = scmp.eq.s32.totalorder %s26_s17, 0  ;;  %p37_p0 = scmp.eq.s32.totalorder %s2939_s21, 0 }
  0x2d   : > { %p3073_p5 = por %p150_p2, %p36_p12  ;;  %p2679_p10 = scmp.lt.s32.totalorder %s2939_s21, 2 }
  0x2e   : > { %s3079_s27 = scalar_select %p27_p13, %s2935_s20, %s29_s16  }
  0x2f   : > { %s3524_s23 = scalar_select %p3073_p5, 1, 0 }
  0x30   : > { %p38_p3 = por %p37_p0, %p36_p12  ;;  %s208_s28 = sand.u32 1, %s2935_s20  }
  0x31   : > { %s2317_s29 = sshll.u32 %s208_s28, 6  ;;  %s2399_s30 = sshll.u32 %s2939_s21, 10 }
  0x32   : > { %s3086_s10 = scalar_lea.hbm %s3509_s0, %s2399_s30  ;;  %s212_s11 = scalar_lea.vmem [#allocation2], %s2317_s29 }
  0x33   : > { %s220_s12 = sshll.u32 %s212_s11, 4  ;;  %p3090_p2 = pnand %p2679_p10, %p38_p3  ;;  %s3088_s12 = int_to_ptr.vmem [resolvable:$true] %s220_s12 }
  0x34   : > { %s3094_s14 = scalar_lea.sflag [#allocation3], %s208_s28  ;;  %s2843_s16 = scalar_lea.hbm %s3086_s10, 1024 }
  0x35   : > { %p2844_p11 = scmp.ne.s32.totalorder %s3086_s10, %s2843_s16  ;;  %p2845_p7 = pneg %p3090_p2 }
  0x36   : > { %s2848_s29 = scalar_lea.hbm %s3509_s0, 2048  ;;  %p2849_p13 = scmp.lt.s32.totalorder %s3086_s10, %s3509_s0 }
  0x37   : > { %p2846_p9 = pnand %p2845_p7, %p2844_p11  ;;  %p2850_p0 = scmp.lt.s32.totalorder %s2848_s29, %s2843_s16 }
  0x39   : > { %p2847_p12 = pneg %p2846_p9  ;;  %p2851_p10 = por %p2850_p0, %p2849_p13 }
  0x3b   : > { %p2852_p3 = pnand %p2851_p10, %p2847_p12 }
  0x3d   : > { %2855 = shalt.err (!%p2852_p3)
}
  0x3e   : > { %s2856_s28 = scalar_lea.vmem %s3088_s12, 1024  ;;  %s2945_s11 = smov [#allocation2]  }
  0x3f   : > { %p2857_p1 = scmp.ne.s32.totalorder %s3088_s12, %s2856_s28  ;;  %s2861_s8 = sshll.u32 %s2945_s11, 4  ;;  %s2862_s8 = int_to_ptr.vmem [resolvable:$false] %s2861_s8 }
  0x40   : > { %s2863_s17 = scalar_lea.vmem %s2862_s8, 2048  ;;  %p2864_p9 = scmp.lt.s32.totalorder %s3088_s12, %s2862_s8 }
  0x41   : > { %p2859_p6 = pnand %p2857_p1, %p2845_p7  ;;  %p2865_p5 = scmp.lt.s32.totalorder %s2863_s17, %s2856_s28 }
  0x43   : > { %p2860_p11 = pneg %p2859_p6  ;;  %p2866_p4 = por %p2865_p5, %p2864_p9 }
  0x45   : > { %p2867_p8 = pnand %p2866_p4, %p2860_p11 }
  0x47   : > { %2870 = shalt.err (!%p2867_p8)
}
  0x48   : > { %s3526_s16 = smov 128   ;;  %p3527_p1 = scmp.ne.s32.totalorder %s3522_s26, 0 }
  0x49   : > { %2672 = dma.hbm_to_vmem [thread:$0]  (!%p3090_p2), %s3086_s10, 1024, %s3088_s12, %s3094_s14, %s3526_s16, %s3526_s16, %s2944_s9  }
  0x4a   : > { %232 = sbr.rel (%p3527_p1) target bundleno = 2059 (0x80b), region = 40  ;;  %s3121_s30 = sand.u32 (!%p3527_p1), 1, %s2931_s19  }
  0x4b   : > { %s2322_s8 = sshll.u32 (!%p3527_p1), %s3121_s30, 6  ;;  %s235_s29 = scalar_lea.sflag (!%p3527_p1), [#allocation3], %s3121_s30 }
  0x4c   : > { %s3127_s13 = scalar_lea.vmem (!%p3527_p1), [#allocation2], %s2322_s8  ;;  %p3528_p4 = scmp.ne.s32.totalorder (!%p3527_p1), %s3520_s24, 0 }
  0x4f   : > { %2914 = dma.done.wait (%p3528_p4), %s235_s29, 1024  }
  0x50   : > { %2916 = vsyncadd (%p3528_p4), %s235_s29, 4294966272  ;;  %p3529_p6 = scmp.eq.s32.totalorder %s3006_s22, 0 }
  0x52   : > { %2918 = dma.done.wait (%p3529_p6), [#allocation6], 1024   ;;  %p3530_p8 = pmov %p3529_p6 }
  0x53   : > { %vm294_vm0 = vcmask 261120   ;;  %v286_v0 = vld [vmem:[#allocation5 + $0x18] sm:$0xff]  ;;  %v285_v1 = vld [vmem:[#allocation5 + $0x10] sm:$0xff]  ;;  %v275_v2 = vld [vmem:[%s3127_s13] sm:$0xff]  ;;  %vm430_vm1 = vcmask 130048   ;;  %s2946_s9 = smov 96  }
  0x54   : > { %2920 = vsyncadd (%p3530_p8), [#allocation6], 4294966272  ;;  %2490 = vmatprep.subr.mxu0 %v286_v0  ;;  %2642 = vmatprep.subr.mxu1 %v286_v0  ;;  %v284_v3 = vld [vmem:[#allocation5 + $0x8] sm:$0xff]  ;;  %v283_v4 = vld [vmem:[#allocation5] sm:$0xff]  ;;  %s2947_s10 = smov 64   ;;  %s2948_s12 = smov 80  }
  0x55   : > { %2491 = vmatpush3.msra.mxu0 %v286_v0  ;;  %2498 = vmatprep.mubr.msk.f32.mxu0 %vm294_vm0, %v275_v2  ;;  %v276_v5 = vld [vmem:[%s3127_s13 + $0x8] sm:$0xff]  ;;  %v277_v6 = vld [vmem:[%s3127_s13 + $0x10] sm:$0xff]  ;;  %v279_v7 = vld [vmem:[%s3127_s13 + $0x20] sm:$0xff]  ;;  %s2949_s14 = smov 112   ;;  %s2950_s6 = smov 48  }
  0x56   : > { %2492 = vmatprep.subr.mxu0 %v285_v1  ;;  %2646 = vmatpush3.msra.mxu1 %v286_v0  ;;  %v280_v8 = vld [vmem:[%s3127_s13 + $0x28] sm:$0xff]  ;;  %v281_v9 = vld [vmem:[%s3127_s13 + $0x30] sm:$0xff]  ;;  %v278_v10 = vld [vmem:[%s3127_s13 + $0x18] sm:$0xff]  ;;  %s2951_s7 = smov 16   ;;  %s272_s17 = scalar_lea.vmem [#allocation8], %s2322_s8 }
  0x57   : > { %2493 = vmatpush3.msra.mxu0 %v285_v1  ;;  %2643 = vmatprep.subr.mxu1 %v285_v1  ;;  %v282_v11 = vld [vmem:[%s3127_s13 + $0x38] sm:$0xff]  ;;  %v2326_v12 = vld [vmem:[%s3511_s2] ss:$0 sm:$0xff]  ;;  %s2401_s16 = sshll.u32 %s3006_s22, 10  ;;  %s2220_s8 = sshll.u32 %s272_s17, 4  ;;  %s3464_s8 = int_to_ptr.vmem [resolvable:$true] %s2220_s8 }
  0x58   : > { %2494 = vmatprep.subr.mxu0 %v284_v3  ;;  %2647 = vmatpush3.msra.mxu1 %v285_v1  ;;  %s3462_s24 = scalar_lea.hbm %s3514_s5, %s2401_s16  ;;  %s2206_s22 = scalar_lea.sflag [#allocation4], %s3121_s30 }
  0x59   : > { %2495 = vmatpush3.msra.mxu0 %v284_v3  ;;  %2644 = vmatprep.subr.mxu1 %v284_v3  ;;  %s2871_s26 = scalar_lea.vmem %s3464_s8, 1024  ;;  %p3531_p2 = scmp.ne.s32.totalorder %s3524_s23, 0 }
  0x5a   : > { %2496 = vmatprep.subr.mxu0 %v283_v4  ;;  %2648 = vmatpush3.msra.mxu1 %v284_v3  ;;  %p2872_p5 = scmp.ne.s32.totalorder %s3464_s8, %s2871_s26 }
  0x5b   : > { %2497 = vmatpush3.msra.mxu0 %v283_v4  ;;  %2645 = vmatprep.subr.mxu1 %v283_v4 }
  0x5c   : > { %2499 = vmatmul.mubr.msk.f32.vlgmr.msra.gmra.mxu0 %vm294_vm0, %v276_v5  ;;  %2649 = vmatpush3.msra.mxu1 %v283_v4  ;;  %p2873_p7 = pnand %p2872_p5, %p3531_p2 }
  0x5d   : > { %2501 = vmatprep.mubr.msk.f32.mxu0 %vm294_vm0, %v277_v6  ;;  %2504 = vmatprep.mubr.msk.f32.mxu1 %vm294_vm0, %v279_v7 }
  0x5e   : > { %2505 = vmatmul.mubr.msk.f32.vlgmr.msra.gmra.mxu1 %vm294_vm0, %v280_v8  ;;  %p2874_p12 = pneg %p2873_p7 }
  0x5f   : > { %2507 = vmatprep.mubr.msk.f32.mxu1 %vm294_vm0, %v281_v9 }
  0x60   : > { %2502 = vmatmul.mubr.msk.f32.gmra.mxu0 %vm294_vm0, %v278_v10 }
  0x62   : > { %2508 = vmatmul.mubr.msk.f32.gmra.mxu1 %vm294_vm0, %v282_v11 }
 0x11c   : > { %v2500_v13 = vpop.f32.mrf.mxu0 }
 0x11d   : > { %v3156_v14 = vadd.f32 %v2500_v13, %v2326_v12 }
 0x11e   : > { %v385_v15 = vpop.f32.mrf.mxu0  ;;  %v2506_v16 = vpop.f32.mrf.mxu1 }
 0x11f   : > { %v3158_v17 = vadd.f32 %v2326_v12, %v385_v15  ;;  %428 = vrot.lane.b32.xlu0 %v3156_v14, %s2946_s9  ;;  %v3171_v24 = vadd.f32 %v2506_v16, %v2326_v12 }
 0x120   : > { %v2503_v18 = vpop.f32.mrf.mxu0  ;;  %v405_v19 = vpop.f32.mrf.mxu1 }
 0x121   : > { %v3161_v20 = vadd.f32 %v2503_v18, %v2326_v12  ;;  %2514 = vmatprep.mubr.msk.f32.mxu1 %vm430_vm1, %v3158_v17  ;;  %v3165_v22 = vadd.f32 %v2326_v12, %v405_v19 }
 0x122   : > { %v395_v21 = vpop.f32.mrf.mxu0  ;;  %v2509_v25 = vpop.f32.mrf.mxu1 }
 0x123   : > { %518 = vrot.lane.b32.xlu1 %v3161_v20, %s2946_s9  ;;  %426 = vrot.lane.b32.xlu0 %v3158_v17, %s2946_s9  ;;  %v3169_v23 = vadd.f32 %v2326_v12, %v395_v21  ;;  %v3177_v26 = vadd.f32 %v2509_v25, %v2326_v12 }
 0x124   : > { %2528 = vmatprep.mubr.msk.f32.mxu0 %vm430_vm1, %v3165_v22  ;;  %v415_v27 = vpop.f32.mrf.mxu1 }
 0x125   : > { %v3180_v28 = vadd.f32 %v2326_v12, %v415_v27 }
 0x127   : > { %516 = vrot.lane.b32.xlu1 %v3169_v23, %s2946_s9  ;;  %607 = vrot.lane.b32.xlu0 %v3171_v24, %s2946_s9 }
 0x12b   : > { %605 = vrot.lane.b32.xlu1 %v3165_v22, %s2946_s9  ;;  %696 = vrot.lane.b32.xlu0 %v3177_v26, %s2946_s9 }
 0x12f   : > { %694 = vrot.lane.b32.xlu1 %v3180_v28, %s2946_s9  ;;  %s2952_s9 = smov [#allocation8]  }
 0x133   : > { %871 = vrot.lane.b32.xlu1 %v3156_v14, %s2947_s10 }
 0x191   : > { %v429_v29 = vpop.permute.xlu0 %428 }
 0x192   : > { %2510 = vmatprep.subr.msk.mxu1 %vm430_vm1, %v429_v29 }
 0x193   : > { %2511 = vmatpush3.xpose.msk.msra.mxu1 %vm430_vm1, %v429_v29 }
 0x195   : > { %v519_v30 = vpop.permute.xlu1 %518  ;;  %v427_v31 = vpop.permute.xlu0 %426 }
 0x196   : > { %2512 = vmatprep.subr.msk.mxu1 %vm430_vm1, %v427_v31 }
 0x197   : > { %2513 = vmatpush3.xpose.msk.msra.mxu1 %vm430_vm1, %v427_v31 }
 0x198   : > { %2517 = vmatprep.subr.msk.mxu1 %vm430_vm1, %v519_v30 }
 0x199   : > { %v517_v32 = vpop.permute.xlu1 %516  ;;  %v608_v33 = vpop.permute.xlu0 %607 }
 0x19a   : > { %2515 = vmatmul.mubr.msk.f32.vlgmr.msra.gmra.mxu1 %vm430_vm1, %v3156_v14  ;;  %2524 = vmatprep.subr.msk.mxu0 %vm430_vm1, %v608_v33 }
 0x19b   : > { %2518 = vmatpush3.xpose.msk.msra.mxu1 %vm430_vm1, %v519_v30  ;;  %2521 = vmatprep.mubr.msk.f32.mxu1 %vm430_vm1, %v3169_v23 }
 0x19c   : > { %2525 = vmatpush3.xpose.msk.msra.mxu0 %vm430_vm1, %v608_v33  ;;  %2519 = vmatprep.subr.msk.mxu1 %vm430_vm1, %v517_v32 }
 0x19d   : > { %v606_v34 = vpop.permute.xlu1 %605  ;;  %v697_v35 = vpop.permute.xlu0 %696 }
 0x19e   : > { %2526 = vmatprep.subr.msk.mxu0 %vm430_vm1, %v606_v34 }
 0x19f   : > { %2520 = vmatpush3.xpose.msk.msra.mxu1 %vm430_vm1, %v517_v32 }
 0x1a0   : > { %2527 = vmatpush3.xpose.msk.msra.mxu0 %vm430_vm1, %v606_v34  ;;  %2531 = vmatprep.subr.msk.mxu1 %vm430_vm1, %v697_v35 }
 0x1a1   : > { %v695_v36 = vpop.permute.xlu1 %694 }
 0x1a2   : > { %2522 = vmatmul.mubr.msk.f32.vlgmr.msra.gmra.mxu1 %vm430_vm1, %v3161_v20 }
 0x1a3   : > { %2529 = vmatmul.mubr.msk.f32.vlgmr.msra.gmra.mxu0 %vm430_vm1, %v3171_v24  ;;  %2532 = vmatpush3.xpose.msk.msra.mxu1 %vm430_vm1, %v697_v35 }
 0x1a4   : > { %2535 = vmatprep.mubr.msk.f32.mxu1 %vm430_vm1, %v3180_v28  ;;  %2533 = vmatprep.subr.msk.mxu1 %vm430_vm1, %v695_v36 }
 0x1a5   : > { %v872_v37 = vpop.permute.xlu1 %871 }
 0x1a6   : > { %2538 = vmatprep.subr.mxu0 %v872_v37 }
 0x1a7   : > { %2534 = vmatpush3.xpose.msk.msra.mxu1 %vm430_vm1, %v695_v36  ;;  %2539 = vmatpush3.msra.mxu0 %v872_v37 }
 0x1aa   : > { %2536 = vmatmul.mubr.msk.f32.vlgmr.msra.gmra.mxu1 %vm430_vm1, %v3177_v26 }
 0x25a   : > { %v2516_v38 = vpop.f32.mrf.mxu1 }
 0x25b   : > { %v784_v39 = vsel %vm430_vm1, %v2516_v38, -inf }
 0x25c   : > { %785 = vmax.xlane.f32.xlu1 %v784_v39  ;;  %v505_v40 = vpop.f32.mrf.mxu1 }
 0x25d   : > { %v781_v45 = vsel %vm430_vm1, %v505_v40, -inf }
 0x262   : > { %v2523_v41 = vpop.f32.mrf.mxu1 }
 0x263   : > { %v2530_v42 = vpop.f32.mrf.mxu0  ;;  %v790_v43 = vsel %vm430_vm1, %v2523_v41, -inf }
 0x264   : > { %v796_v44 = vsel %vm430_vm1, %v2530_v42, -inf  ;;  %791 = vmax.xlane.f32.xlu1 %v790_v43  ;;  %v594_v48 = vpop.f32.mrf.mxu1 }
 0x265   : > { %797 = vmax.xlane.f32.xlu0 %v796_v44  ;;  %v683_v46 = vpop.f32.mrf.mxu0  ;;  %v787_v49 = vsel %vm430_vm1, %v594_v48, -inf }
 0x266   : > { %v793_v47 = vsel %vm430_vm1, %v683_v46, -inf }
 0x269   : > { %782 = vmax.xlane.f32.xlu0 %v781_v45 }
 0x26a   : > { %v2537_v50 = vpop.f32.mrf.mxu1 }
 0x26b   : > { %v802_v51 = vsel %vm430_vm1, %v2537_v50, -inf }
 0x26c   : > { %v3249_v52 = vpop.f32.mrf.mxu1 }
 0x26d   : > { %794 = vmax.xlane.f32.xlu0 %v793_v47  ;;  %v799_v53 = vsel %vm430_vm1, %v3249_v52, -inf }
 0x271   : > { %788 = vmax.xlane.f32.xlu0 %v787_v49 }
 0x275   : > { %803 = vmax.xlane.f32.xlu0 %v802_v51  ;;  %958 = vrot.lane.b32.xlu1 %v3161_v20, %s2947_s10 }
 0x279   : > { %1045 = vrot.lane.b32.xlu1 %v3171_v24, %s2947_s10 }
 0x27d   : > { %1043 = vrot.lane.b32.xlu1 %v3165_v22, %s2947_s10 }
 0x281   : > { %1223 = vrot.lane.b32.xlu1 %v3156_v14, %s2948_s12 }
 0x285   : > { %1221 = vrot.lane.b32.xlu1 %v3158_v17, %s2948_s12 }
 0x289   : > { %1217 = vrot.lane.b32.xlu1 %v3158_v17, %s2949_s14 }
 0x28b   : > { %869 = vrot.lane.b32.xlu0 %v3158_v17, %s2947_s10 }
 0x28d   : > { %1312 = vrot.lane.b32.xlu1 %v3169_v23, %s2948_s12 }
 0x28f   : > { %956 = vrot.lane.b32.xlu0 %v3169_v23, %s2947_s10 }
 0x293   : > { %1132 = vrot.lane.b32.xlu0 %v3177_v26, %s2947_s10 }
 0x297   : > { %1130 = vrot.lane.b32.xlu0 %v3180_v28, %s2947_s10  ;;  %s2875_s10 = sshll.u32 %s2952_s9, 4  ;;  %s2876_s10 = int_to_ptr.vmem [resolvable:$false] %s2875_s10 }
 0x298   : > { %p2878_p13 = scmp.lt.s32.totalorder %s3464_s8, %s2876_s10 }
 0x29b   : > { %1314 = vrot.lane.b32.xlu0 %v3161_v20, %s2948_s12 }
 0x29f   : > { %1219 = vrot.lane.b32.xlu0 %v3156_v14, %s2949_s14 }
 0x2a3   : > { %1405 = vrot.lane.b32.xlu0 %v3171_v24, %s2948_s12 }
 0x2b1   : > { %800 = vmax.xlane.f32.xlu1 %v799_v53 }
 0x2c2   : > { %1308 = vrot.lane.b32.xlu1 %v3169_v23, %s2949_s14 }
 0x2e5   : > { %v786_v54 = vpop.xlane.xlu1 %785 }
 0x2e6   : > { %v806_v55 = vsub.f32 %v2516_v38, %v786_v54 }
 0x2e8   : > { %v815_v56 = vmul.f32 1.442695, %v806_v55 }
 0x2ea   : > { %2727 = vpow2.f32 %v815_v56 }
 0x2ed   : > { %v792_v57 = vpop.xlane.xlu1 %791 }
 0x2ee   : > { %v798_v58 = vpop.xlane.xlu0 %797  ;;  %v808_v61 = vsub.f32 %v2523_v41, %v792_v57 }
 0x2ef   : > { %v810_v59 = vsub.f32 %v2530_v42, %v798_v58 }
 0x2f0   : > { %v819_v1 = vmul.f32 1.442695, %v808_v61 }
 0x2f1   : > { %v823_v60 = vmul.f32 1.442695, %v810_v59  ;;  %v959_v62 = vpop.permute.xlu1 %958 }
 0x2f2   : > { %v783_v63 = vpop.xlane.xlu0 %782  ;;  %2545 = vmatprep.subr.mxu1 %v959_v62 }
 0x2f3   : > { %2729 = vpow2.f32 %v823_v60  ;;  %v805_v0 = vsub.f32 %v505_v40, %v783_v63  ;;  %2546 = vmatpush3.msra.mxu1 %v959_v62 }
 0x2f5   : > { %v813_v2 = vmul.f32 1.442695, %v805_v0  ;;  %v3263_v21 = vpop.permute.xlu1 %1045 }
 0x2f6   : > { %v795_v3 = vpop.xlane.xlu0 %794 }
 0x2f7   : > { %v3255_v4 = vpop.eup %2727  ;;  %2731 = vpow2.f32 %v813_v2  ;;  %v809_v5 = vsub.f32 %v683_v46, %v795_v3 }
 0x2f8   : > { %v832_v6 = vsel %vm430_vm1, %v3255_v4, 0.0  ;;  %2733 = vpow2.f32 %v819_v1 }
 0x2f9   : > { %v821_v7 = vmul.f32 1.442695, %v809_v5  ;;  %833 = vadd.xlane.f32.xlu0 %v832_v6  ;;  %v1044_v38 = vpop.permute.xlu1 %1043 }
 0x2fa   : > { %v789_v8 = vpop.xlane.xlu0 %788 }
 0x2fb   : > { %2735 = vpow2.f32 %v821_v7  ;;  %v807_v9 = vsub.f32 %v594_v48, %v789_v8 }
 0x2fd   : > { %v817_v10 = vmul.f32 1.442695, %v807_v9  ;;  %v1224_v39 = vpop.permute.xlu1 %1223 }
 0x2fe   : > { %v804_v11 = vpop.xlane.xlu0 %803 }
 0x2ff   : > { %2737 = vpow2.f32 %v817_v10  ;;  %v812_v12 = vsub.f32 %v2537_v50, %v804_v11 }
 0x300   : > { %v3259_v13 = vpop.eup %2729 }
 0x301   : > { %v827_v15 = vmul.f32 1.442695, %v812_v12  ;;  %v844_v16 = vsel %vm430_vm1, %v3259_v13, 0.0  ;;  %v1222_v40 = vpop.permute.xlu1 %1221 }
 0x302   : > { %845 = vadd.xlane.f32.xlu0 %v844_v16  ;;  %v870_v18 = vpop.permute.xlu0 %869 }
 0x303   : > { %2739 = vpow2.f32 %v827_v15  ;;  %2540 = vmatprep.subr.mxu0 %v870_v18 }
 0x304   : > { %v2732_v19 = vpop.eup %2731  ;;  %2541 = vmatpush3.msra.mxu0 %v870_v18 }
 0x305   : > { %2552 = vmatprep.subr.mxu0 %v3263_v21  ;;  %v829_v25 = vsel %vm430_vm1, %v2732_v19, 0.0  ;;  %v3267_v27 = vpop.eup %2733  ;;  %v1218_v41 = vpop.permute.xlu1 %1217 }
 0x306   : > { %v957_v29 = vpop.permute.xlu0 %956  ;;  %830 = vadd.xlane.f32.xlu1 %v829_v25  ;;  %v838_v32 = vsel %vm430_vm1, %v3267_v27, 0.0 }
 0x307   : > { %2547 = vmatprep.subr.mxu1 %v957_v29 }
 0x308   : > { %v2736_v30 = vpop.eup %2735  ;;  %2548 = vmatpush3.msra.mxu1 %v957_v29 }
 0x309   : > { %v841_v31 = vsel %vm430_vm1, %v2736_v30, 0.0  ;;  %v3293_v42 = vpop.permute.xlu1 %1312 }
 0x30a   : > { %842 = vadd.xlane.f32.xlu0 %v841_v31  ;;  %v3272_v33 = vpop.permute.xlu0 %1132  ;;  %839 = vadd.xlane.f32.xlu1 %v838_v32 }
 0x30b   : > { %2559 = vmatprep.subr.mxu1 %v3272_v33 }
 0x30c   : > { %v3275_v34 = vpop.eup %2737 }
 0x30d   : > { %v835_v35 = vsel %vm430_vm1, %v3275_v34, 0.0 }
 0x30e   : > { %836 = vadd.xlane.f32.xlu1 %v835_v35  ;;  %v1131_v48 = vpop.permute.xlu0 %1130 }
 0x310   : > { %v3279_v36 = vpop.eup %2739 }
 0x311   : > { %v850_v37 = vsel %vm430_vm1, %v3279_v36, 0.0 }
 0x312   : > { %851 = vadd.xlane.f32.xlu0 %v850_v37  ;;  %v3306_v49 = vpop.permute.xlu0 %1314 }
 0x316   : > { %v1220_v50 = vpop.permute.xlu0 %1219 }
 0x31a   : > { %v1406_v51 = vpop.permute.xlu0 %1405 }
 0x31f   : > { %1403 = vrot.lane.b32.xlu1 %v3165_v22, %s2948_s12 }
 0x328   : > { %1310 = vrot.lane.b32.xlu0 %v3161_v20, %s2949_s14 }
 0x32c   : > { %1496 = vrot.lane.b32.xlu0 %v3177_v26, %s2948_s12 }
 0x330   : > { %1401 = vrot.lane.b32.xlu0 %v3171_v24, %s2949_s14 }
 0x334   : > { %1490 = vrot.lane.b32.xlu0 %v3180_v28, %s2949_s14 }
 0x33a   : > { %v801_v43 = vpop.xlane.xlu1 %800 }
 0x33b   : > { %v811_v44 = vsub.f32 %v3249_v52, %v801_v43 }
 0x33d   : > { %v825_v45 = vmul.f32 1.442695, %v811_v44 }
 0x33e   : > { %v3308_v52 = vpop.permute.xlu1 %1308 }
 0x33f   : > { %2741 = vpow2.f32 %v825_v45 }
 0x34c   : > { %v3296_v46 = vpop.eup %2741 }
 0x34d   : > { %v847_v47 = vsel %vm430_vm1, %v3296_v46, 0.0 }
 0x34e   : > { %848 = vadd.xlane.f32.xlu1 %v847_v47 }
 0x35f   : > { %1399 = vrot.lane.b32.xlu1 %v3165_v22, %s2949_s14 }
 0x363   : > { %1494 = vrot.lane.b32.xlu1 %v3180_v28, %s2948_s12  ;;  %s2877_s12 = scalar_lea.vmem %s2876_s10, 2048 }
 0x364   : > { %p2879_p0 = scmp.lt.s32.totalorder %s2877_s12, %s2871_s26 }
 0x366   : > { %p2880_p10 = por %p2879_p0, %p2878_p13 }
 0x367   : > { %1492 = vrot.lane.b32.xlu1 %v3177_v26, %s2949_s14 }
 0x368   : > { %p2881_p3 = pnand %p2880_p10, %p2874_p12 }
 0x382   : > { %v834_v53 = vpop.xlane.xlu0 %833 }
 0x383   : > { %2743 = vrcp.f32 %v834_v53 }
 0x38b   : > { %v846_v54 = vpop.xlane.xlu0 %845 }
 0x38f   : > { %v831_v55 = vpop.xlane.xlu1 %830 }
 0x390   : > { %2745 = vrcp.f32 %v831_v55  ;;  %v2744_v59 = vpop.eup %2743 }
 0x391   : > { %2747 = vrcp.f32 %v846_v54  ;;  %v862_v62 = vmul.f32 %v2744_v59, %v3255_v4 }
 0x393   : > { %v843_v56 = vpop.xlane.xlu0 %842  ;;  %v840_v57 = vpop.xlane.xlu1 %839 }
 0x394   : > { %2749 = vrcp.f32 %v843_v56 }
 0x395   : > { %2751 = vrcp.f32 %v840_v57 }
 0x397   : > { %v837_v58 = vpop.xlane.xlu1 %836 }
 0x398   : > { %2753 = vrcp.f32 %v837_v58 }
 0x39b   : > { %v1404_v7 = vpop.permute.xlu1 %1403  ;;  %v852_v8 = vpop.xlane.xlu0 %851 }
 0x39c   : > { %2755 = vrcp.f32 %v852_v8 }
 0x39d   : > { %v2746_v60 = vpop.eup %2745 }
 0x39e   : > { %v861_v61 = vmul.f32 %v2746_v60, %v2732_v19  ;;  %v2748_v63 = vpop.eup %2747 }
 0x39f   : > { %v866_v2 = vmul.f32 %v2748_v63, %v3259_v13  ;;  %v1311_v9 = vpop.permute.xlu0 %1310 }
 0x3a0   : > { %2542 = vmatprep.mubr.msk.f32.mxu0 %vm430_vm1, %v861_v61 }
 0x3a1   : > { %v2750_v0 = vpop.eup %2749  ;;  %2543 = vmatmul.mubr.msk.f32.vlgmr.msra.gmra.mxu0 %vm430_vm1, %v862_v62 }
 0x3a2   : > { %2553 = vmatpush3.msra.mxu0 %v3263_v21  ;;  %v865_v1 = vmul.f32 %v2750_v0, %v2736_v30  ;;  %v2752_v3 = vpop.eup %2751 }
 0x3a3   : > { %2554 = vmatprep.subr.mxu0 %v1044_v38  ;;  %v864_v6 = vmul.f32 %v2752_v3, %v3267_v27  ;;  %v1497_v10 = vpop.permute.xlu0 %1496 }
 0x3a4   : > { %2555 = vmatpush3.msra.mxu0 %v1044_v38  ;;  %2556 = vmatprep.mubr.msk.f32.mxu0 %vm430_vm1, %v865_v1 }
 0x3a5   : > { %v2754_v5 = vpop.eup %2753  ;;  %2566 = vmatprep.subr.msk.mxu0 %vm430_vm1, %v1224_v39  ;;  %2557 = vmatmul.mubr.msk.f32.vlgmr.msra.gmra.mxu0 %vm430_vm1, %v866_v2 }
 0x3a6   : > { %2567 = vmatpush3.xpose.msk.msra.mxu0 %vm430_vm1, %v1224_v39  ;;  %2570 = vmatprep.mubr.msk.f32.mxu0 %vm430_vm1, %v1218_v41  ;;  %v863_v4 = vmul.f32 %v2754_v5, %v3275_v34 }
 0x3a7   : > { %2568 = vmatprep.subr.msk.mxu0 %vm430_vm1, %v1222_v40  ;;  %v1402_v13 = vpop.permute.xlu0 %1401 }
 0x3a8   : > { %2549 = vmatprep.mubr.msk.f32.mxu1 %vm430_vm1, %v863_v4 }
 0x3a9   : > { %2550 = vmatmul.mubr.msk.f32.vlgmr.msra.gmra.mxu1 %vm430_vm1, %v864_v6  ;;  %v2756_v15 = vpop.eup %2755 }
 0x3aa   : > { %2560 = vmatpush3.msra.mxu1 %v3272_v33  ;;  %2569 = vmatpush3.xpose.msk.msra.mxu0 %vm430_vm1, %v1222_v40  ;;  %v868_v19 = vmul.f32 %v2756_v15, %v3279_v36 }
 0x3ab   : > { %2561 = vmatprep.subr.mxu1 %v1131_v48  ;;  %2580 = vmatprep.subr.msk.mxu0 %vm430_vm1, %v1406_v51  ;;  %v1491_v21 = vpop.permute.xlu0 %1490 }
 0x3ac   : > { %2562 = vmatpush3.msra.mxu1 %v1131_v48 }
 0x3ad   : > { %2571 = vmatmul.mubr.msk.f32.vlgmr.msra.gmra.mxu0 %vm430_vm1, %v1220_v50  ;;  %2573 = vmatprep.subr.msk.mxu1 %vm430_vm1, %v3306_v49 }
 0x3ae   : > { %2581 = vmatpush3.xpose.msk.msra.mxu0 %vm430_vm1, %v1406_v51 }
 0x3af   : > { %2582 = vmatprep.subr.msk.mxu0 %vm430_vm1, %v1404_v7 }
 0x3b2   : > { %2583 = vmatpush3.xpose.msk.msra.mxu0 %vm430_vm1, %v1404_v7 }
 0x3d7   : > { %v849_v11 = vpop.xlane.xlu1 %848 }
 0x3d8   : > { %2757 = vrcp.f32 %v849_v11 }
 0x3db   : > { %v1400_v12 = vpop.permute.xlu1 %1399 }
 0x3dc   : > { %2584 = vmatprep.mubr.msk.f32.mxu0 %vm430_vm1, %v1400_v12 }
 0x3dd   : > { %2585 = vmatmul.mubr.msk.f32.vlgmr.msra.gmra.mxu0 %vm430_vm1, %v1402_v13 }
 0x3df   : > { %v1495_v25 = vpop.permute.xlu1 %1494 }
 0x3e3   : > { %v1493_v27 = vpop.permute.xlu1 %1492 }
 0x3e5   : > { %v2758_v16 = vpop.eup %2757 }
 0x3e6   : > { %v867_v18 = vmul.f32 %v2758_v16, %v3296_v46 }
 0x3e8   : > { %2563 = vmatprep.mubr.msk.f32.mxu1 %vm430_vm1, %v867_v18 }
 0x3e9   : > { %2564 = vmatmul.mubr.msk.f32.vlgmr.msra.gmra.mxu1 %vm430_vm1, %v868_v19 }
 0x3ea   : > { %2574 = vmatpush3.xpose.msk.msra.mxu1 %vm430_vm1, %v3306_v49  ;;  %2577 = vmatprep.mubr.msk.f32.mxu1 %vm430_vm1, %v3308_v52 }
 0x3eb   : > { %2575 = vmatprep.subr.msk.mxu1 %vm430_vm1, %v3293_v42 }
 0x3ee   : > { %2576 = vmatpush3.xpose.msk.msra.mxu1 %vm430_vm1, %v3293_v42 }
 0x3ef   : > { %2587 = vmatprep.subr.msk.mxu1 %vm430_vm1, %v1497_v10 }
 0x3f1   : > { %2578 = vmatmul.mubr.msk.f32.vlgmr.msra.gmra.mxu1 %vm430_vm1, %v1311_v9 }
 0x3f2   : > { %2588 = vmatpush3.xpose.msk.msra.mxu1 %vm430_vm1, %v1497_v10  ;;  %2591 = vmatprep.mubr.msk.f32.mxu1 %vm430_vm1, %v1491_v21 }
 0x3f3   : > { %2589 = vmatprep.subr.msk.mxu1 %vm430_vm1, %v1495_v25 }
 0x3f6   : > { %2590 = vmatpush3.xpose.msk.msra.mxu1 %vm430_vm1, %v1495_v25 }
 0x3f9   : > { %2592 = vmatmul.mubr.msk.f32.vlgmr.msra.gmra.mxu1 %vm430_vm1, %v1493_v27 }
 0x461   : > { %v3355_v29 = vpop.f32.mrf.mxu0 }
 0x463   : > { %v3357_v30 = vpop.f32.mrf.mxu0 }
 0x465   : > { %v3359_v31 = vpop.f32.mrf.mxu0 }
 0x467   : > { %v3361_v32 = vpop.f32.mrf.mxu0 }
 0x469   : > { %v3366_v40 = vpop.f32.mrf.mxu1 }
 0x46b   : > { %v3368_v41 = vpop.f32.mrf.mxu1 }
 0x46d   : > { %v2572_v33 = vpop.f32.mrf.mxu0 }
 0x46e   : > { %v1584_v34 = vsel %vm430_vm1, %v2572_v33, -inf }
 0x46f   : > { %1585 = vmax.xlane.f32.xlu1 %v1584_v34  ;;  %v1299_v35 = vpop.f32.mrf.mxu0 }
 0x470   : > { %v1581_v36 = vsel %vm430_vm1, %v1299_v35, -inf }
 0x471   : > { %1582 = vmax.xlane.f32.xlu0 %v1581_v36 }
 0x49d   : > { %v2586_v37 = vpop.f32.mrf.mxu0 }
 0x49e   : > { %v1596_v50 = vsel %vm430_vm1, %v2586_v37, -inf }
 0x49f   : > { %v1481_v38 = vpop.f32.mrf.mxu0 }
 0x4a0   : > { %v1593_v39 = vsel %vm430_vm1, %v1481_v38, -inf }
 0x4a1   : > { %1594 = vmax.xlane.f32.xlu1 %v1593_v39 }
 0x4a9   : > { %v3370_v42 = vpop.f32.mrf.mxu1 }
 0x4ab   : > { %v3372_v43 = vpop.f32.mrf.mxu1 }
 0x4b1   : > { %v2579_v44 = vpop.f32.mrf.mxu1 }
 0x4b2   : > { %v1590_v47 = vsel %vm430_vm1, %v2579_v44, -inf }
 0x4b3   : > { %v1390_v45 = vpop.f32.mrf.mxu1 }
 0x4b4   : > { %v1587_v46 = vsel %vm430_vm1, %v1390_v45, -inf }
 0x4b5   : > { %1588 = vmax.xlane.f32.xlu0 %v1587_v46 }
 0x4b9   : > { %1591 = vmax.xlane.f32.xlu0 %v1590_v47  ;;  %v2593_v48 = vpop.f32.mrf.mxu1 }
 0x4ba   : > { %v1602_v52 = vsel %vm430_vm1, %v2593_v48, -inf }
 0x4bb   : > { %v1572_v49 = vpop.f32.mrf.mxu1 }
 0x4bc   : > { %v1599_v51 = vsel %vm430_vm1, %v1572_v49, -inf }
 0x4bd   : > { %1597 = vmax.xlane.f32.xlu0 %v1596_v50  ;;  %1600 = vmax.xlane.f32.xlu1 %v1599_v51 }
 0x4c1   : > { %1603 = vmax.xlane.f32.xlu0 %v1602_v52 }
 0x4ce   : > { %1671 = vrot.lane.b32.xlu1 %v3156_v14, %s2950_s6 }
 0x4d2   : > { %1758 = vrot.lane.b32.xlu1 %v3161_v20, %s2950_s6 }
 0x4d6   : > { %1756 = vrot.lane.b32.xlu1 %v3169_v23, %s2950_s6 }
 0x4d7   : > { %1669 = vrot.lane.b32.xlu0 %v3158_v17, %s2950_s6 }
 0x4da   : > { %1843 = vrot.lane.b32.xlu1 %v3165_v22, %s2950_s6 }
 0x4db   : > { %1845 = vrot.lane.b32.xlu0 %v3171_v24, %s2950_s6 }
 0x4f8   : > { %v1586_v53 = vpop.xlane.xlu1 %1585 }
 0x4f9   : > { %v1606_v54 = vsub.f32 %v2572_v33, %v1586_v53 }
 0x4fa   : > { %v1583_v55 = vpop.xlane.xlu0 %1582 }
 0x4fb   : > { %v1615_v56 = vmul.f32 1.442695, %v1606_v54  ;;  %v1605_v14 = vsub.f32 %v1299_v35, %v1583_v55 }
 0x4fd   : > { %2759 = vpow2.f32 %v1615_v56  ;;  %v1613_v57 = vmul.f32 1.442695, %v1605_v14 }
 0x4ff   : > { %2761 = vpow2.f32 %v1613_v57 }
 0x50a   : > { %v3391_v20 = vpop.eup %2759 }
 0x50b   : > { %v1632_v23 = vsel %vm430_vm1, %v3391_v20, 0.0 }
 0x50c   : > { %v3395_v17 = vpop.eup %2761  ;;  %1633 = vadd.xlane.f32.xlu0 %v1632_v23 }
 0x50d   : > { %v1629_v22 = vsel %vm430_vm1, %v3395_v17, 0.0 }
 0x50e   : > { %1630 = vadd.xlane.f32.xlu1 %v1629_v22 }
 0x52a   : > { %v1595_v24 = vpop.xlane.xlu1 %1594 }
 0x52b   : > { %v1609_v58 = vsub.f32 %v1481_v38, %v1595_v24 }
 0x52d   : > { %v1621_v59 = vmul.f32 1.442695, %v1609_v58 }
 0x52f   : > { %2763 = vpow2.f32 %v1621_v59 }
 0x53c   : > { %v3399_v60 = vpop.eup %2763 }
 0x53d   : > { %v1641_v61 = vsel %vm430_vm1, %v3399_v60, 0.0 }
 0x53e   : > { %v1589_v62 = vpop.xlane.xlu0 %1588  ;;  %1642 = vadd.xlane.f32.xlu1 %v1641_v61 }
 0x53f   : > { %v1607_v63 = vsub.f32 %v1390_v45, %v1589_v62 }
 0x541   : > { %v1617_v0 = vmul.f32 1.442695, %v1607_v63  ;;  %v2060_v63 = vld [vmem:[#allocation7 + $0x18] sm:$0xff] }
 0x542   : > { %v1592_v1 = vpop.xlane.xlu0 %1591 }
 0x543   : > { %2765 = vpow2.f32 %v1617_v0  ;;  %v1608_v2 = vsub.f32 %v2579_v44, %v1592_v1  ;;  %v2059_v0 = vld [vmem:[#allocation7 + $0x10] sm:$0xff]  ;;  %v2058_v1 = vld [vmem:[#allocation7 + $0x8] sm:$0xff] }
 0x545   : > { %v1619_v7 = vmul.f32 1.442695, %v1608_v2  ;;  %v2057_v2 = vld [vmem:[#allocation7] sm:$0xff] }
 0x546   : > { %v1598_v3 = vpop.xlane.xlu0 %1597  ;;  %v1601_v5 = vpop.xlane.xlu1 %1600 }
 0x547   : > { %v1610_v4 = vsub.f32 %v2586_v37, %v1598_v3  ;;  %v1611_v6 = vsub.f32 %v1572_v49, %v1601_v5 }
 0x549   : > { %v1623_v8 = vmul.f32 1.442695, %v1610_v4  ;;  %v1625_v9 = vmul.f32 1.442695, %v1611_v6 }
 0x54a   : > { %v1604_v10 = vpop.xlane.xlu0 %1603  ;;  %v1672_v11 = vpop.permute.xlu1 %1671 }
 0x54b   : > { %2767 = vpow2.f32 %v1623_v8  ;;  %v1612_v12 = vsub.f32 %v2593_v48, %v1604_v10  ;;  %2594 = vmatprep.subr.mxu0 %v1672_v11 }
 0x54c   : > { %2769 = vpow2.f32 %v1625_v9  ;;  %2595 = vmatpush3.msra.mxu0 %v1672_v11 }
 0x54d   : > { %2771 = vpow2.f32 %v1619_v7  ;;  %v1627_v13 = vmul.f32 1.442695, %v1612_v12 }
 0x54e   : > { %v1670_v15 = vpop.permute.xlu0 %1669  ;;  %v1759_v16 = vpop.permute.xlu1 %1758 }
 0x54f   : > { %2596 = vmatprep.subr.mxu0 %v1670_v15  ;;  %2601 = vmatprep.subr.mxu1 %v1759_v16  ;;  %2773 = vpow2.f32 %v1627_v13 }
 0x550   : > { %v2766_v18 = vpop.eup %2765  ;;  %2597 = vmatpush3.msra.mxu0 %v1670_v15  ;;  %2602 = vmatpush3.msra.mxu1 %v1759_v16 }
 0x551   : > { %v1635_v19 = vsel %vm430_vm1, %v2766_v18, 0.0 }
 0x552   : > { %v1846_v21 = vpop.permute.xlu0 %1845  ;;  %1636 = vadd.xlane.f32.xlu1 %v1635_v19  ;;  %v1757_v25 = vpop.permute.xlu1 %1756 }
 0x553   : > { %2603 = vmatprep.subr.mxu1 %v1757_v25  ;;  %2608 = vmatprep.subr.mxu0 %v1846_v21 }
 0x554   : > { %2604 = vmatpush3.msra.mxu1 %v1757_v25 }
 0x556   : > { %v1844_v44 = vpop.permute.xlu1 %1843 }
 0x558   : > { %v2768_v27 = vpop.eup %2767 }
 0x559   : > { %v2770_v33 = vpop.eup %2769  ;;  %v1644_v34 = vsel %vm430_vm1, %v2768_v27, 0.0 }
 0x55a   : > { %v2772_v35 = vpop.eup %2771  ;;  %1645 = vadd.xlane.f32.xlu0 %v1644_v34  ;;  %v1647_v36 = vsel %vm430_vm1, %v2770_v33, 0.0 }
 0x55b   : > { %1648 = vadd.xlane.f32.xlu1 %v1647_v36  ;;  %v1638_v37 = vsel %vm430_vm1, %v2772_v35, 0.0 }
 0x55c   : > { %v2774_v38 = vpop.eup %2773 }
 0x55d   : > { %v1650_v39 = vsel %vm430_vm1, %v2774_v38, 0.0 }
 0x55e   : > { %1639 = vadd.xlane.f32.xlu0 %v1638_v37 }
 0x562   : > { %1651 = vadd.xlane.f32.xlu0 %v1650_v39 }
 0x56c   : > { %1930 = vrot.lane.b32.xlu1 %v3180_v28, %s2950_s6 }
 0x578   : > { %1932 = vrot.lane.b32.xlu0 %v3177_v26, %s2950_s6 }
 0x595   : > { %v1634_v45 = vpop.xlane.xlu0 %1633 }
 0x596   : > { %2775 = vrcp.f32 %v1634_v45 }
 0x597   : > { %v1631_v46 = vpop.xlane.xlu1 %1630 }
 0x598   : > { %2777 = vrcp.f32 %v1631_v46 }
 0x5a3   : > { %v2776_v47 = vpop.eup %2775 }
 0x5a4   : > { %v1662_v50 = vmul.f32 %v2776_v47, %v3391_v20 }
 0x5a5   : > { %v2778_v48 = vpop.eup %2777 }
 0x5a6   : > { %v1661_v49 = vmul.f32 %v2778_v48, %v3395_v17 }
 0x5a8   : > { %2598 = vmatprep.mubr.msk.f32.mxu0 %vm430_vm1, %v1661_v49 }
 0x5a9   : > { %2599 = vmatmul.mubr.msk.f32.vlgmr.msra.gmra.mxu0 %vm430_vm1, %v1662_v50 }
 0x5aa   : > { %2609 = vmatpush3.msra.mxu0 %v1846_v21 }
 0x5ab   : > { %2610 = vmatprep.subr.mxu0 %v1844_v44 }
 0x5ac   : > { %2611 = vmatpush3.msra.mxu0 %v1844_v44 }
 0x5ad   : > { %2622 = vmatprep.subr.mxu0 %v2060_v63 }
 0x5c7   : > { %v1643_v28 = vpop.xlane.xlu1 %1642 }
 0x5c8   : > { %2779 = vrcp.f32 %v1643_v28 }
 0x5d5   : > { %v2780_v26 = vpop.eup %2779 }
 0x5d6   : > { %v1665_v51 = vmul.f32 %v2780_v26, %v3399_v60 }
 0x5d8   : > { %2612 = vmatprep.mubr.msk.f32.mxu0 %vm430_vm1, %v1665_v51 }
 0x5db   : > { %v1637_v52 = vpop.xlane.xlu1 %1636 }
 0x5dc   : > { %2781 = vrcp.f32 %v1637_v52 }
 0x5e3   : > { %v1646_v53 = vpop.xlane.xlu0 %1645 }
 0x5e4   : > { %2783 = vrcp.f32 %v1646_v53  ;;  %v1649_v54 = vpop.xlane.xlu1 %1648 }
 0x5e5   : > { %2785 = vrcp.f32 %v1649_v54 }
 0x5e7   : > { %v1640_v55 = vpop.xlane.xlu0 %1639 }
 0x5e8   : > { %2787 = vrcp.f32 %v1640_v55  ;;  %v1931_v61 = vpop.permute.xlu1 %1930 }
 0x5e9   : > { %v2782_v56 = vpop.eup %2781 }
 0x5ea   : > { %v1663_v14 = vmul.f32 %v2782_v56, %v2766_v18 }
 0x5eb   : > { %v1652_v57 = vpop.xlane.xlu0 %1651 }
 0x5ec   : > { %2789 = vrcp.f32 %v1652_v57  ;;  %2605 = vmatprep.mubr.msk.f32.mxu1 %vm430_vm1, %v1663_v14 }
 0x5ef   : > { %v1933_v20 = vpop.permute.xlu0 %1932 }
 0x5f0   : > { %2615 = vmatprep.subr.mxu1 %v1933_v20 }
 0x5f1   : > { %v2784_v23 = vpop.eup %2783 }
 0x5f2   : > { %v1666_v17 = vmul.f32 %v2784_v23, %v2768_v27  ;;  %v2786_v22 = vpop.eup %2785 }
 0x5f3   : > { %v1667_v59 = vmul.f32 %v2786_v22, %v2770_v33 }
 0x5f4   : > { %2613 = vmatmul.mubr.msk.f32.vlgmr.msra.gmra.mxu0 %vm430_vm1, %v1666_v17 }
 0x5f5   : > { %v2788_v24 = vpop.eup %2787  ;;  %2623 = vmatpush3.msra.mxu0 %v2060_v63 }
 0x5f6   : > { %v1664_v58 = vmul.f32 %v2788_v24, %v2772_v35  ;;  %2624 = vmatprep.subr.mxu0 %v2059_v0 }
 0x5f7   : > { %2625 = vmatpush3.msra.mxu0 %v2059_v0 }
 0x5f8   : > { %2606 = vmatmul.mubr.msk.f32.vlgmr.msra.gmra.mxu1 %vm430_vm1, %v1664_v58  ;;  %2626 = vmatprep.subr.mxu0 %v2058_v1 }
 0x5f9   : > { %v2790_v60 = vpop.eup %2789  ;;  %2616 = vmatpush3.msra.mxu1 %v1933_v20  ;;  %2619 = vmatprep.mubr.msk.f32.mxu1 %vm430_vm1, %v1667_v59 }
 0x5fa   : > { %2617 = vmatprep.subr.mxu1 %v1931_v61  ;;  %v1668_v62 = vmul.f32 %v2790_v60, %v2774_v38  ;;  %2627 = vmatpush3.msra.mxu0 %v2058_v1 }
 0x5fb   : > { %2618 = vmatpush3.msra.mxu1 %v1931_v61  ;;  %2628 = vmatprep.subr.mxu0 %v2057_v2 }
 0x5fc   : > { %2620 = vmatmul.mubr.msk.f32.vlgmr.msra.gmra.mxu1 %vm430_vm1, %v1668_v62  ;;  %2629 = vmatpush3.msra.mxu0 %v2057_v2 }
 0x669   : > { %v2600_v3 = vpop.f32.mrf.mxu0 }
 0x66a   : > { %2027 = vrot.lane.b32.xlu1 %v2600_v3, %s2951_s7 }
 0x66b   : > { %v1747_v5 = vpop.f32.mrf.mxu0 }
 0x66c   : > { %2025 = vrot.lane.b32.xlu0 %v1747_v5, %s2951_s7 }
 0x6b4   : > { %v2614_v6 = vpop.f32.mrf.mxu0 }
 0x6b6   : > { %v1921_v8 = vpop.f32.mrf.mxu0 }
 0x6b8   : > { %v2607_v4 = vpop.f32.mrf.mxu1 }
 0x6b9   : > { %2031 = vrot.lane.b32.xlu1 %v2607_v4, %s2951_s7 }
 0x6ba   : > { %v1834_v7 = vpop.f32.mrf.mxu1 }
 0x6bb   : > { %2029 = vrot.lane.b32.xlu0 %v1834_v7, %s2951_s7 }
 0x6bc   : > { %v2621_v9 = vpop.f32.mrf.mxu1 }
 0x6bd   : > { %2035 = vrot.lane.b32.xlu1 %v2614_v6, %s2951_s7 }
 0x6be   : > { %v2008_v10 = vpop.f32.mrf.mxu1 }
 0x6bf   : > { %2033 = vrot.lane.b32.xlu0 %v1921_v8, %s2951_s7 }
 0x6c1   : > { %2039 = vrot.lane.b32.xlu1 %v2621_v9, %s2951_s7 }
 0x6c3   : > { %2037 = vrot.lane.b32.xlu0 %v2008_v10, %s2951_s7 }
 0x6dc   : > { %v2028_v11 = vpop.permute.xlu1 %2027 }
 0x6dd   : > { %v2050_v15 = vsel %vm430_vm1, %v3355_v29, %v2028_v11 }
 0x6de   : > { %v2026_v12 = vpop.permute.xlu0 %2025 }
 0x6df   : > { %v2049_v13 = vsel %vm430_vm1, %v3357_v30, %v2026_v12 }
 0x6e0   : > { %2630 = vmatprep.mubr.msk.f32.mxu0 %vm294_vm0, %v2049_v13 }
 0x6e1   : > { %2631 = vmatmul.mubr.msk.f32.vlgmr.msra.gmra.mxu0 %vm294_vm0, %v2050_v15 }
 0x72b   : > { %v2032_v16 = vpop.permute.xlu1 %2031 }
 0x72c   : > { %v2052_v21 = vsel %vm430_vm1, %v3366_v40, %v2032_v16 }
 0x72d   : > { %v2030_v18 = vpop.permute.xlu0 %2029 }
 0x72e   : > { %v2051_v19 = vsel %vm430_vm1, %v3368_v41, %v2030_v18 }
 0x72f   : > { %2633 = vmatprep.mubr.msk.f32.mxu0 %vm294_vm0, %v2051_v19  ;;  %v2036_v25 = vpop.permute.xlu1 %2035 }
 0x730   : > { %2634 = vmatmul.mubr.msk.f32.gmra.mxu0 %vm294_vm0, %v2052_v21  ;;  %v2054_v27 = vsel %vm430_vm1, %v3359_v31, %v2036_v25  ;;  %v2383_v31 = vld [vmem:[%s3513_s4] ss:$0 sm:$0xff] }
 0x731   : > { %v2034_v30 = vpop.permute.xlu0 %2033 }
 0x732   : > { %v2053_v29 = vsel %vm430_vm1, %v3361_v32, %v2034_v30 }
 0x733   : > { %2636 = vmatprep.mubr.msk.f32.mxu0 %vm294_vm0, %v2053_v29  ;;  %v2040_v33 = vpop.permute.xlu1 %2039 }
 0x734   : > { %2637 = vmatmul.mubr.msk.f32.gmra.mxu0 %vm294_vm0, %v2054_v27  ;;  %v2056_v34 = vsel %vm430_vm1, %v3370_v42, %v2040_v33 }
 0x735   : > { %v2038_v41 = vpop.permute.xlu0 %2037 }
 0x736   : > { %v2055_v40 = vsel %vm430_vm1, %v3372_v43, %v2038_v41 }
 0x737   : > { %2639 = vmatprep.mubr.msk.f32.mxu0 %vm294_vm0, %v2055_v40 }
 0x738   : > { %2640 = vmatmul.mubr.msk.f32.gmra.mxu0 %vm294_vm0, %v2056_v34 }
 0x7a1   : > { %v2632_v32 = vpop.f32.mrf.mxu0 }
 0x7a2   : > { %v2164_v35 = vadd.f32 %v2632_v32, %v2383_v31 }
 0x7a3   : > { %v2158_v36 = vpop.f32.mrf.mxu0 }
 0x7a4   : > { %2198 = vst.msk [vmem:[%s272_s17 + $0x8] sm:$0xff] %vm294_vm0, %v2164_v35  ;;  %v2159_v43 = vadd.f32 %v2383_v31, %v2158_v36 }
 0x7a6   : > { %2197 = vst.msk [vmem:[%s272_s17] sm:$0xff] %vm294_vm0, %v2159_v43 }
 0x7f0   : > { %v2635_v42 = vpop.f32.mrf.mxu0 }
 0x7f1   : > { %v2174_v37 = vadd.f32 %v2635_v42, %v2383_v31 }
 0x7f2   : > { %v2168_v38 = vpop.f32.mrf.mxu0 }
 0x7f3   : > { %2200 = vst.msk [vmem:[%s272_s17 + $0x18] sm:$0xff] %vm294_vm0, %v2174_v37  ;;  %v2169_v39 = vadd.f32 %v2383_v31, %v2168_v38 }
 0x7f4   : > { %v2638_v44 = vpop.f32.mrf.mxu0 }
 0x7f5   : > { %2199 = vst.msk [vmem:[%s272_s17 + $0x10] sm:$0xff] %vm294_vm0, %v2169_v39  ;;  %v2184_v45 = vadd.f32 %v2638_v44, %v2383_v31 }
 0x7f6   : > { %v2178_v46 = vpop.f32.mrf.mxu0 }
 0x7f7   : > { %2202 = vst.msk [vmem:[%s272_s17 + $0x28] sm:$0xff] %vm294_vm0, %v2184_v45  ;;  %v2179_v47 = vadd.f32 %v2383_v31, %v2178_v46 }
 0x7f8   : > { %v2641_v48 = vpop.f32.mrf.mxu0 }
 0x7f9   : > { %2201 = vst.msk [vmem:[%s272_s17 + $0x20] sm:$0xff] %vm294_vm0, %v2179_v47  ;;  %v2194_v49 = vadd.f32 %v2641_v48, %v2383_v31 }
 0x7fa   : > { %v2188_v50 = vpop.f32.mrf.mxu0 }
 0x7fb   : > { %2204 = vst.msk [vmem:[%s272_s17 + $0x38] sm:$0xff] %vm294_vm0, %v2194_v49  ;;  %v2189_v28 = vadd.f32 %v2383_v31, %v2188_v50 }
 0x7fd   : > { %2203 = vst.msk [vmem:[%s272_s17 + $0x30] sm:$0xff] %vm294_vm0, %v2189_v28 }
 0x7fe   : > { %2884 = shalt.err (!%p2881_p3)
}
 0x7ff   : > { %s2885_s14 = scalar_lea.hbm %s3462_s24, 1024  ;;  %s2889_s28 = scalar_lea.hbm %s3514_s5, 2048 }
 0x800   : > { %p2886_p11 = scmp.ne.s32.totalorder %s3462_s24, %s2885_s14  ;;  %p2890_p4 = scmp.lt.s32.totalorder %s3462_s24, %s3514_s5 }
 0x801   : > { %p2891_p6 = scmp.lt.s32.totalorder %s2889_s28, %s2885_s14 }
 0x802   : > { %p2887_p9 = pnand %p2886_p11, %p3531_p2 }
 0x803   : > { %p2892_p8 = por %p2891_p6, %p2890_p4 }
 0x804   : > { %p2888_p1 = pneg %p2887_p9 }
 0x806   : > { %p2893_p5 = pnand %p2892_p8, %p2888_p1 }
 0x808   : > { %2896 = shalt.err (!%p2893_p5)
}
 0x809   : > { %s2953_s16 = smov 128   ;;  %s2954_s29 = smov 8  }
 0x80a   : > { %2660 = dma.vmem_to_hbm [thread:$0]  (%p3531_p2), %s3464_s8, 1024, %s3462_s24, %s2206_s22, %s2953_s16, %s2953_s16, %s2954_s29  }
 0x80b PF: > { %s2235_s13 = sand.u32 1, %s2927_s18   ;;  %p3532_p7 = scmp.ne.s32.totalorder %s3521_s25, 0 }
 0x80c   : > { %p3533_p12 = scmp.ge.s32.totalorder %s2939_s21, 2  ;;  %s2236_s26 = scalar_lea.sflag [#allocation4], %s2235_s13 }
 0x80e   : > { %p2674_p13 = pnand %p3533_p12, %p3532_p7 }
 0x810   : > { %p2675_p0 = pneg %p2674_p13 }
 0x812   : > { %2922 = dma.done.wait (%p2675_p0), %s2236_s26, 1024  }
 0x813   : > { %2924 = vsyncadd (%p2675_p0), %s2236_s26, 4294966272  ;;  %p19_p10 = scmp.ge.s32.totalorder %s3063_s15, 4   ;;  %s3534_s18 = smov %s2931_s19 }
 0x814   : > { %s3535_s19 = smov %s2935_s20  ;;  %s3536_s20 = smov %s3079_s27 }
 0x815   : > { %s3537_s21 = smov %s3063_s15  ;;  %21 = sbr.rel (!%p19_p10) target bundleno = 6 (0x6), region = 93 }
 0x81a   :  { %2241 = vsyncpa [#allocation3], 1 }
 0x81b   :  { %2243 = vsyncpa [#allocation3 + $0x1], 1 }
 0x81c   :  { %2244 = vsyncpa [#allocation6], 1 }
 0x81d   :  { %2245 = vsyncpa [#allocation4], 1 }
 0x81e   :  { %2247 = vsyncpa [#allocation4 + $0x1], 1 }

</bundles_post_ra>
